<compile_context>
chip_gen: v7x
topology: tpu7x:2x2x1
jax: 0.10.0
libtpu: 0.0.40
codegen_flags: <defaults>
</compile_context>

<pallas_src>
import functools

import jax
import jax.numpy as jnp
from jax.experimental import pallas as pl
from jax.experimental.pallas import tpu as pltpu


def _round_up(x, m):
    return (x + m - 1) // m * m


def _vmem_capacity_bytes():
    try:
        return int(pltpu.get_tpu_info().vmem_capacity_bytes)
    except Exception:
        return 64 << 20  # conservative (v7x) fallback


def _pick_hidden_tile(hidden, th_request):
    """Largest 128-multiple divisor of hidden that is <= th_request."""
    if hidden % 128 != 0:
        return hidden  # small / odd sizes: single full-hidden block
    th = min(th_request, hidden)
    th = (th // 128) * 128
    while th > 128 and hidden % th != 0:
        th -= 128
    if hidden % th != 0:
        th = 128
    return th


def _working_set_bytes(tm, dim, th, cbytes, obytes):
    """Double-buffered tiles + accumulator + internal f32 intermediates."""
    x_t = 2 * tm * dim * cbytes
    o_t = 2 * tm * dim * obytes
    wgu_t = 2 * dim * 2 * th * cbytes
    bgu_t = 2 * 2 * th * 4
    wd_t = 2 * th * dim * cbytes
    bd_t = 2 * dim * 4
    acc = tm * dim * 4
    interm = tm * 2 * th * 4 + tm * th * max(cbytes, 4)  # p (f32) + h
    return x_t + o_t + wgu_t + bgu_t + wd_t + bd_t + acc + interm


def _vision_mlp_kernel(x_ref, wgu_ref, bgu_ref, wd_ref, bd_ref, o_ref, acc_ref, *, th):
    # Grid: (token tiles, hidden tiles).  Hidden axis is the reduction axis.
    j = pl.program_id(1)

    @pl.when(j == 0)
    def _():
        # Initialize the f32 accumulator with the down_proj bias.
        acc_ref[...] = jnp.broadcast_to(bd_ref[...].astype(jnp.float32),
                                        acc_ref.shape)

    x = x_ref[...]                                       # (tm, dim)

    # Fused gate|up projection: one MXU matmul producing (tm, 2*th), f32 acc.
    p = jnp.dot(x, wgu_ref[...], preferred_element_type=jnp.float32) + bgu_ref[...]
    g = p[:, :th]                                        # gate slice
    u = p[:, th:]                                        # up slice

    # quick_gelu(g) = g * sigmoid(1.702 * g), then elementwise gate with u (f32).
    h = (g * jax.nn.sigmoid(1.702 * g)) * u

    # Partial down projection for this hidden tile, accumulated in f32.
    acc_ref[...] += jnp.dot(h.astype(wd_ref.dtype), wd_ref[...],
                            preferred_element_type=jnp.float32)

    @pl.when(j == pl.num_programs(1) - 1)
    def _():
        o_ref[...] = acc_ref[...].astype(o_ref.dtype)


def prepare_vision_mlp_params(wg, bg, wu, bu, wd, bd, *, th=1024,
                              compute_dtype=jnp.bfloat16):
    """One-time parameter fusion / cast (hoisted out of the forward path).

    wg, wu: (dim, hidden) pre-transposed gate/up weights; bg, bu: (1, hidden).
    wd:     (hidden, dim) pre-transposed down weight;     bd: (1, dim).
    Returns a dict of fused, compute-dtype arrays plus the chosen hidden tile.
    """
    dim, hidden = wg.shape
    th = _pick_hidden_tile(hidden, th)
    n_h = hidden // th

    # Interleave per hidden tile: [g_0|u_0|g_1|u_1|...] so fusion survives blocking.
    wgu = jnp.concatenate([wg.reshape(dim, n_h, th),
                           wu.reshape(dim, n_h, th)], axis=2)
    wgu = wgu.reshape(dim, 2 * hidden).astype(compute_dtype)
    bgu = jnp.concatenate([bg.reshape(1, n_h, th),
                           bu.reshape(1, n_h, th)], axis=2)
    bgu = bgu.reshape(1, 2 * hidden).astype(jnp.float32)

    return dict(
        wgu=wgu, bgu=bgu,
        wd=wd.astype(compute_dtype), bd=bd.astype(jnp.float32),
        dim=dim, hidden=hidden, th=th, compute_dtype=compute_dtype,
    )


def vision_mlp(x, params, *, tm=None):
    """Fused VisionMlp forward on (M, dim) tokens with pre-fused params."""
    M, dim = x.shape
    assert dim == params["dim"]
    hidden = params["hidden"]
    th = params["th"]
    n_h = hidden // th
    compute_dtype = params["compute_dtype"]
    out_dtype = x.dtype

    cbytes = jnp.dtype(compute_dtype).itemsize
    obytes = jnp.dtype(out_dtype).itemsize
    vmem_cap = _vmem_capacity_bytes()
    vmem_budget = vmem_cap - (8 << 20)          # headroom for Mosaic internals

    # --- generation-aware token tile -----------------------------------------
    if tm is None:
        tm = 1024 if vmem_cap >= (96 << 20) else 512   # v5e/v6e vs v7x
    tm = min(tm, _round_up(M, 8))
    tm = max(8, (tm // 8) * 8)
    while tm > 8 and _working_set_bytes(tm, dim, th, cbytes, obytes) > vmem_budget:
        tm = max(8, tm // 2)

    working_set = _working_set_bytes(tm, dim, th, cbytes, obytes)
    vmem_limit = int(min(vmem_cap - (2 << 20),
                         max(32 << 20, working_set + (8 << 20))))

    # --- token padding (no M % tm restriction) --------------------------------
    m_pad = _round_up(M, tm)
    if m_pad != M:
        x = jnp.pad(x, ((0, m_pad - M), (0, 0)))
    x_c = x.astype(compute_dtype)

    wgu, bgu, wd_c, bd_f = params["wgu"], params["bgu"], params["wd"], params["bd"]

    grid = (m_pad // tm, n_h)
    n_token_tiles = grid[0]
    cost = pl.CostEstimate(
        flops=6 * m_pad * dim * hidden,                 # gate + up (fused) + down
        transcendentals=m_pad * hidden,                 # sigmoid
        bytes_accessed=int(
            x_c.size * cbytes
            # weights/biases are re-streamed once per token tile:
            + n_token_tiles * ((wgu.size + wd_c.size) * cbytes
                               + (bgu.size + bd_f.size) * 4)
            + m_pad * dim * obytes),
    )

    out = pl.pallas_call(
        functools.partial(_vision_mlp_kernel, th=th),
        out_shape=jax.ShapeDtypeStruct((m_pad, dim), out_dtype),
        grid_spec=pltpu.PrefetchScalarGridSpec(
            num_scalar_prefetch=0,
            grid=grid,
            in_specs=[
                pl.BlockSpec((tm, dim), lambda i, j: (i, 0)),        # x tokens
                pl.BlockSpec((dim, 2 * th), lambda i, j: (0, j)),    # fused gate|up W
                pl.BlockSpec((1, 2 * th), lambda i, j: (0, j)),      # fused gate|up b
                pl.BlockSpec((th, dim), lambda i, j: (j, 0)),        # down W
                pl.BlockSpec((1, dim), lambda i, j: (0, 0)),         # down b
            ],
            out_specs=pl.BlockSpec((tm, dim), lambda i, j: (i, 0)),
            scratch_shapes=[pltpu.VMEM((tm, dim), jnp.float32)],
        ),
        compiler_params=pltpu.CompilerParams(
            dimension_semantics=("parallel", "arbitrary"),
            vmem_limit_bytes=vmem_limit),
        cost_estimate=cost,
    )(x_c, wgu, bgu, wd_c, bd_f)

    return out[:M] if m_pad != M else out


def vision_mlp_hidden_state(hidden_state, params, **kw):
    """(B, S, dim) -> (B, S, dim) wrapper matching VisionMlp.forward."""
    b, s, dim = hidden_state.shape
    y = vision_mlp(hidden_state.reshape(b * s, dim), params, **kw)
    return y.reshape(b, s, dim)


def vision_mlp_ref(x, wg, bg, wu, bu, wd, bd):
    g = x @ wg + bg
    u = x @ wu + bu
    h = (g * jax.nn.sigmoid(1.702 * g)) * u
    return h @ wd + bd


if __name__ == "__main__":
    # Module hyperparameters (small, module-consistent smoke test).
    dim = 32          # out_hidden_size
    hidden_dim = 64   # intermediate_size
    batch, seq = 2, 8

    key = jax.random.PRNGKey(0)
    k_x, k_wg, k_bg, k_wu, k_bu, k_wd, k_bd = jax.random.split(key, 7)

    # Deterministic "nn.Linear"-style init: U(-1/sqrt(fan_in), 1/sqrt(fan_in)).
    def linear_params(kw, kb, fan_in, fan_out):
        bound = 1.0 / (fan_in ** 0.5)
        w = jax.random.uniform(kw, (fan_in, fan_out), jnp.float32, -bound, bound)
        b = jax.random.uniform(kb, (1, fan_out), jnp.float32, -bound, bound)
        return w, b

    wg, bg = linear_params(k_wg, k_bg, dim, hidden_dim)        # gate_proj (transposed)
    wu, bu = linear_params(k_wu, k_bu, dim, hidden_dim)        # up_proj   (transposed)
    wd, bd = linear_params(k_wd, k_bd, hidden_dim, dim)        # down_proj (transposed)

    hidden_state = jax.random.normal(k_x, (batch, seq, dim), jnp.float32)
    x2d = hidden_state.reshape(batch * seq, dim)
    ref = vision_mlp_ref(x2d, wg, bg, wu, bu, wd, bd).reshape(batch, seq, dim)

    # f32 compute path: tight check.
    params_f32 = prepare_vision_mlp_params(wg, bg, wu, bu, wd, bd,
                                           compute_dtype=jnp.float32)
    out = vision_mlp_hidden_state(hidden_state, params_f32)
    jax.block_until_ready(out)
    assert jnp.allclose(out, ref, atol=1e-5, rtol=1e-5)

    # Default bf16 MXU path (f32 accumulation): loose check.
    params_bf16 = prepare_vision_mlp_params(wg, bg, wu, bu, wd, bd)
    out_bf16 = vision_mlp_hidden_state(hidden_state, params_bf16)
    jax.block_until_ready(out_bf16)
    assert jnp.allclose(out_bf16, ref, atol=5e-2, rtol=5e-2)

    print("KERNEL_OK")
</pallas_src>

<mosaic_0001>
module attributes {stable_mosaic.version = 11 : i64} {
  func.func @_vision_mlp_kernel(%arg0: i32, %arg1: i32, %arg2: memref<16x32xf32, #tpu.memory_space<vmem>>, %arg3: memref<32x128xf32, #tpu.memory_space<vmem>>, %arg4: memref<1x128xf32, #tpu.memory_space<vmem>>, %arg5: memref<64x32xf32, #tpu.memory_space<vmem>>, %arg6: memref<1x32xf32, #tpu.memory_space<vmem>>, %arg7: memref<16x32xf32, #tpu.memory_space<vmem>>, %arg8: memref<16x32xf32, #tpu.memory_space<vmem>>) attributes {dimension_semantics = [#tpu.dimension_semantics<parallel>, #tpu.dimension_semantics<arbitrary>], iteration_bounds = array<i64: 1, 1>, scalar_prefetch = 0 : i64, scratch_operands = 1 : i64, tpu.core_type = #tpu.core_type<tc>, window_params = [{transform_indices = @transform_0, window_bounds = array<i64: 16, 32>}, {transform_indices = @transform_1, window_bounds = array<i64: 32, 128>}, {transform_indices = @transform_2, window_bounds = array<i64: 1, 128>}, {transform_indices = @transform_3, window_bounds = array<i64: 64, 32>}, {pipeline_mode = #tpu.pipeline_mode<synchronous>, transform_indices = @transform_4, window_bounds = array<i64: 1, 32>}, {transform_indices = @transform_5, window_bounds = array<i64: 16, 32>}]} {
    %c0_i32 = arith.constant 0 : i32
    %0 = arith.cmpi eq, %arg1, %c0_i32 : i32
    %1 = arith.extui %0 : i1 to i32
    %c0_i32_0 = arith.constant 0 : i32
    %2 = arith.cmpi ne, %1, %c0_i32_0 : i32
    scf.if %2 {
      %c0_17 = arith.constant 0 : index
      %c0_18 = arith.constant 0 : index
      %28 = vector.load %arg6[%c0_17, %c0_18] : memref<1x32xf32, #tpu.memory_space<vmem>>, vector<1x32xf32>
      %29 = vector.shape_cast %28 : vector<1x32xf32> to vector<1x32xf32>
      %30 = vector.broadcast %29 : vector<1x32xf32> to vector<16x32xf32>
      %c0_19 = arith.constant 0 : index
      %c0_20 = arith.constant 0 : index
      %31 = vector.load %arg8[%c0_19, %c0_20] : memref<16x32xf32, #tpu.memory_space<vmem>>, vector<16x32xf32>
      tpu.vector_store %arg8[%c0_19, %c0_20], %30 {strides = array<i32>} : memref<16x32xf32, #tpu.memory_space<vmem>>, vector<16x32xf32>,
    } else {
    }
    %c0 = arith.constant 0 : index
    %c0_1 = arith.constant 0 : index
    %3 = vector.load %arg2[%c0, %c0_1] : memref<16x32xf32, #tpu.memory_space<vmem>>, vector<16x32xf32>
    %c0_2 = arith.constant 0 : index
    %c0_3 = arith.constant 0 : index
    %4 = vector.load %arg3[%c0_2, %c0_3] : memref<32x128xf32, #tpu.memory_space<vmem>>, vector<32x128xf32>
    %cst = arith.constant dense<0.000000e+00> : vector<16x128xf32>
    %5 = tpu.matmul %3, %4, %cst {dimension_numbers = #tpu.dot_dimension_numbers<[1], [0], [0], [1], [0, 0, 1, 1], [], []>} : vector<16x32xf32>, vector<32x128xf32>, vector<16x128xf32> -> vector<16x128xf32>
    %c0_4 = arith.constant 0 : index
    %c0_5 = arith.constant 0 : index
    %6 = vector.load %arg4[%c0_4, %c0_5] : memref<1x128xf32, #tpu.memory_space<vmem>>, vector<1x128xf32>
    %7 = vector.broadcast %6 : vector<1x128xf32> to vector<16x128xf32>
    %8 = arith.addf %5, %7 : vector<16x128xf32>
    %9 = vector.extract_strided_slice %8 {offsets = [0, 0], sizes = [16, 64], strides = [1, 1]} : vector<16x128xf32> to vector<16x64xf32>
    %10 = vector.extract_strided_slice %8 {offsets = [0, 64], sizes = [16, 64], strides = [1, 1]} : vector<16x128xf32> to vector<16x64xf32>
    %cst_6 = arith.constant 1.702000e+00 : f32
    %11 = vector.broadcast %cst_6 : f32 to vector<16x64xf32>
    %12 = arith.mulf %11, %9 : vector<16x64xf32>
    %13 = arith.negf %12 : vector<16x64xf32>
    %14 = math.exp %13 : vector<16x64xf32>
    %cst_7 = arith.constant 1.000000e+00 : f32
    %15 = vector.broadcast %cst_7 : f32 to vector<16x64xf32>
    %16 = arith.addf %15, %14 : vector<16x64xf32>
    %17 = arith.divf %15, %16 : vector<16x64xf32>
    %18 = arith.mulf %9, %17 : vector<16x64xf32>
    %19 = arith.mulf %18, %10 : vector<16x64xf32>
    %c0_8 = arith.constant 0 : index
    %c0_9 = arith.constant 0 : index
    %20 = vector.load %arg8[%c0_8, %c0_9] : memref<16x32xf32, #tpu.memory_space<vmem>>, vector<16x32xf32>
    %c0_10 = arith.constant 0 : index
    %c0_11 = arith.constant 0 : index
    %21 = vector.load %arg5[%c0_10, %c0_11] : memref<64x32xf32, #tpu.memory_space<vmem>>, vector<64x32xf32>
    %cst_12 = arith.constant dense<0.000000e+00> : vector<16x32xf32>
    %22 = tpu.matmul %19, %21, %cst_12 {dimension_numbers = #tpu.dot_dimension_numbers<[1], [0], [0], [1], [0, 0, 1, 1], [], []>} : vector<16x64xf32>, vector<64x32xf32>, vector<16x32xf32> -> vector<16x32xf32>
    %23 = arith.addf %20, %22 : vector<16x32xf32>
    %c0_13 = arith.constant 0 : index
    %c0_14 = arith.constant 0 : index
    %24 = vector.load %arg8[%c0_13, %c0_14] : memref<16x32xf32, #tpu.memory_space<vmem>>, vector<16x32xf32>
    tpu.vector_store %arg8[%c0_13, %c0_14], %23 {strides = array<i32>} : memref<16x32xf32, #tpu.memory_space<vmem>>, vector<16x32xf32>,
    %c0_i32_15 = arith.constant 0 : i32
    %25 = arith.cmpi eq, %arg1, %c0_i32_15 : i32
    %26 = arith.extui %25 : i1 to i32
    %c0_i32_16 = arith.constant 0 : i32
    %27 = arith.cmpi ne, %26, %c0_i32_16 : i32
    scf.if %27 {
      %c0_17 = arith.constant 0 : index
      %c0_18 = arith.constant 0 : index
      %28 = vector.load %arg8[%c0_17, %c0_18] : memref<16x32xf32, #tpu.memory_space<vmem>>, vector<16x32xf32>
      %c0_19 = arith.constant 0 : index
      %c0_20 = arith.constant 0 : index
      %29 = vector.load %arg7[%c0_19, %c0_20] : memref<16x32xf32, #tpu.memory_space<vmem>>, vector<16x32xf32>
      tpu.vector_store %arg7[%c0_19, %c0_20], %28 {strides = array<i32>} : memref<16x32xf32, #tpu.memory_space<vmem>>, vector<16x32xf32>,
    } else {
    }
    return
  }
  func.func @transform_0(%arg0: i32, %arg1: i32) -> (i32, i32) {
    %c0_i32 = arith.constant 0 : i32
    %c0_i32_0 = arith.constant 0 : i32
    return %arg0, %c0_i32 : i32, i32
  }
  func.func @transform_1(%arg0: i32, %arg1: i32) -> (i32, i32) {
    %c0_i32 = arith.constant 0 : i32
    %c0_i32_0 = arith.constant 0 : i32
    return %c0_i32, %arg1 : i32, i32
  }
  func.func @transform_2(%arg0: i32, %arg1: i32) -> (i32, i32) {
    %c0_i32 = arith.constant 0 : i32
    %c0_i32_0 = arith.constant 0 : i32
    return %c0_i32, %arg1 : i32, i32
  }
  func.func @transform_3(%arg0: i32, %arg1: i32) -> (i32, i32) {
    %c0_i32 = arith.constant 0 : i32
    %c0_i32_0 = arith.constant 0 : i32
    return %arg1, %c0_i32 : i32, i32
  }
  func.func @transform_4(%arg0: i32, %arg1: i32) -> (i32, i32) {
    %c0_i32 = arith.constant 0 : i32
    %c0_i32_0 = arith.constant 0 : i32
    %c0_i32_1 = arith.constant 0 : i32
    return %c0_i32, %c0_i32_0 : i32, i32
  }
  func.func @transform_5(%arg0: i32, %arg1: i32) -> (i32, i32) {
    %c0_i32 = arith.constant 0 : i32
    %c0_i32_0 = arith.constant 0 : i32
    return %arg0, %c0_i32 : i32, i32
  }
}

</mosaic_0001>

<bundles_post_ra>
// kernel: tpu_custom_call.1
= control target key start
LH: loop header
LB: loop body
LE: loop exit
PB: predicated region body
PF: predicated region fallthrough
CT: control target
= control target key end

     0   :  { %vm32_vm0 = vcmask 261120   ;;  %s491_s0 = inlined_call_operand.vmem [shape: f32[16,32], index: 0, kind: input, shape index: {}]   ;;  %s492_s1 = inlined_call_operand.vmem [shape: f32[32,128], index: 1, kind: input, shape index: {}]   ;;  %s493_s2 = inlined_call_operand.vmem [shape: f32[1,128], index: 2, kind: input, shape index: {}]   ;;  %s494_s3 = inlined_call_operand.vmem [shape: f32[64,32], index: 3, kind: input, shape index: {}]   ;;  %s495_s4 = inlined_call_operand.vmem [shape: f32[1,32], index: 4, kind: input, shape index: {}]   ;;  %s496_s5 = inlined_call_operand.hbm [shape: f32[16,32], index: 5, kind: output, shape index: {}]  }
   0x1   :  { %v37_v0 = vld [vmem:[%s492_s1] sm:$0xff]  ;;  %v38_v1 = vld [vmem:[%s492_s1 + $0x8] sm:$0xff]  ;;  %v39_v2 = vld [vmem:[%s492_s1 + $0x10] sm:$0xff] }
   0x2   :  { %v329_v3 = vpack.c.bf16 %v38_v1, %v37_v0  ;;  %v40_v4 = vld [vmem:[%s492_s1 + $0x18] sm:$0xff]  ;;  %v35_v5 = vld [vmem:[%s491_s0] sm:$0xff] }
   0x3   :  { %v333_v6 = vpack.c.bf16 %v40_v4, %v39_v2  ;;  %307 = vmatprep.mubr.msk.f32.mxu0 %vm32_vm0, %v35_v5 }
   0x4   :  { %10 = vsyncpa [#allocation4], 0  ;;  %330 = vmatprep.subr.bf16.mxu0 %v329_v3  ;;  %v36_v7 = vld [vmem:[%s491_s0 + $0x8] sm:$0xff]  ;;  %v158_v8 = vld [vmem:[%s494_s3] sm:$0xff]  ;;  %s389_s23 = smov 64   ;;  %vm166_vm1 = vcmask 523264  }
   0x5   :  { %332 = vmatpush3.bf16.msra.mxu0 %v329_v3  ;;  %v159_v9 = vld [vmem:[%s494_s3 + $0x8] sm:$0xff]  ;;  %v160_v10 = vld [vmem:[%s494_s3 + $0x10] sm:$0xff]  ;;  %v161_v12 = vld [vmem:[%s494_s3 + $0x18] sm:$0xff] }
   0x6   :  { %334 = vmatprep.subr.bf16.mxu0 %v333_v6  ;;  %v337_v11 = vpack.c.bf16 %v159_v9, %v158_v8  ;;  %v341_v13 = vpack.c.bf16 %v161_v12, %v160_v10  ;;  %v162_v14 = vld [vmem:[%s494_s3 + $0x20] sm:$0xff]  ;;  %v163_v15 = vld [vmem:[%s494_s3 + $0x28] sm:$0xff]  ;;  %v164_v17 = vld [vmem:[%s494_s3 + $0x30] sm:$0xff] }
   0x7   :  { %v345_v16 = vpack.c.bf16 %v163_v15, %v162_v14  ;;  %v165_v18 = vld [vmem:[%s494_s3 + $0x38] sm:$0xff]  ;;  %v275_v20 = vld [vmem:[%s495_s4] ss:$0 sm:$0xff] }
   0x8   :  { %338 = vmatprep.subr.bf16.mxu1 %v337_v11  ;;  %v349_v19 = vpack.c.bf16 %v165_v18, %v164_v17  ;;  %34 = vst.msk [vmem:[#allocation2 + $0x8] sm:$0xff] %vm32_vm0, %v275_v20  ;;  %33 = vst.msk [vmem:[#allocation2] sm:$0xff] %vm32_vm0, %v275_v20  ;;  %v276_v21 = vld [vmem:[%s493_s2] ss:$0 sm:$0xff]  ;;  %s390_s2 = smov [#allocation3]  }
   0x9   :  { %336 = vmatpush3.bf16.msra.mxu0 %v333_v6  ;;  %340 = vmatpush3.bf16.msra.mxu1 %v337_v11  ;;  %s264_s3 = sshll.u32 %s390_s2, 4  ;;  %s265_s3 = int_to_ptr.vmem [resolvable:$true] %s264_s3 }
   0xa   :  { %342 = vmatprep.subr.bf16.mxu1 %v341_v13  ;;  %s365_s4 = scalar_lea.vmem %s265_s3, 256  ;;  %p370_p1 = scmp.lt.s32.totalorder %s265_s3, %s265_s3 }
   0xb   :  { %p366_p0 = scmp.ne.s32.totalorder %s265_s3, %s365_s4  ;;  %p371_p2 = scmp.lt.s32.totalorder %s365_s4, %s365_s4 }
   0xc   :  { %308 = vmatmul.mubr.msk.f32.vlgmr.msra.gmra.mrb[0].mxu0 %vm32_vm0, %v36_v7 }
   0xd   :  { %344 = vmatpush3.bf16.msra.mxu1 %v341_v13  ;;  %p372_p3 = por %p371_p2, %p370_p1 }
   0xe   :  { %346 = vmatprep.subr.bf16.mxu1 %v345_v16 }
   0xf   :  { %v157_v42 = vld [vmem:[#allocation2 + $0x8] sm:$0xff]  ;;  %v156_v43 = vld [vmem:[#allocation2] sm:$0xff]  ;;  %p373_p4 = pnand %p372_p3, %p366_p0 }
  0x11   :  { %348 = vmatpush3.bf16.msra.mxu1 %v345_v16 }
  0x12   :  { %350 = vmatprep.subr.bf16.mxu1 %v349_v19 }
  0x15   :  { %352 = vmatpush3.bf16.msra.mxu1 %v349_v19 }
  0xdf   :  { %v309_v22 = vpop.f32.mrb[0].mxu0 }
  0xe0   :  { %v121_v23 = vpop.f32.mrb[1].mxu0  ;;  %v127_v25 = vadd.f32 %v309_v22, %v276_v21 }
  0xe1   :  { %v122_v24 = vadd.f32 %v276_v21, %v121_v23 }
  0xe2   :  { %v280_v27 = vmul.f32 -1.702, %v127_v25 }
  0xe3   :  { %148 = vrot.lane.b32.xlu0 %v122_v24, %s389_s23  ;;  %v279_v26 = vmul.f32 -1.702, %v122_v24 }
  0xe4   :  { %v136_v29 = vmul.f32 1.442695, %v280_v27 }
  0xe5   :  { %v134_v28 = vmul.f32 1.442695, %v279_v26 }
  0xe7   :  { %150 = vrot.lane.b32.xlu0 %v127_v25, %s389_s23  ;;  %357 = vpow2.f32 %v134_v28 }
  0xe8   :  { %359 = vpow2.f32 %v136_v29 }
  0xf1   :  { %v358_v30 = vpop.eup %357 }
  0xf2   :  { %v138_v31 = vadd.f32 1.0, %v358_v30  ;;  %v360_v32 = vpop.eup %359 }
  0xf3   :  { %v139_v33 = vadd.f32 1.0, %v360_v32 }
  0xf4   :  { %361 = vrcp.f32 %v138_v31 }
  0xf5   :  { %363 = vrcp.f32 %v139_v33 }
  0xfe   :  { %v362_v34 = vpop.eup %361 }
  0xff   :  { %v144_v35 = vmul.f32 %v362_v34, %v122_v24  ;;  %v364_v36 = vpop.eup %363 }
 0x100   :  { %v145_v39 = vmul.f32 %v364_v36, %v127_v25 }
 0x155   :  { %v149_v37 = vpop.permute.xlu0 %148 }
 0x156   :  { %v154_v38 = vmul.f32 %v149_v37, %v144_v35 }
 0x158   :  { %326 = vmatprep.mubr.msk.f32.mxu1 %vm166_vm1, %v154_v38 }
 0x159   :  { %v151_v40 = vpop.permute.xlu0 %150 }
 0x15a   :  { %v155_v41 = vmul.f32 %v151_v40, %v145_v39 }
 0x15c   :  { %327 = vmatmul.mubr.msk.f32.vlgmr.msra.gmra.mrb[0].mxu1 %vm166_vm1, %v155_v41 }
 0x22f   :  { %v328_v44 = vpop.f32.mrb[0].mxu1 }
 0x230   :  { %v249_v45 = vadd.f32 %v328_v44, %v157_v42  ;;  %v239_v46 = vpop.f32.mrb[1].mxu1 }
 0x231   :  { %v248_v47 = vadd.f32 %v239_v46, %v156_v43 }
 0x232   :  { %251 = vst.msk [vmem:[#allocation2 + $0x8] sm:$0xff] %vm32_vm0, %v249_v45 }
 0x233   :  { %250 = vst.msk [vmem:[#allocation2] sm:$0xff] %vm32_vm0, %v248_v47 }
 0x239   :  { %v256_v48 = vld [vmem:[#allocation2 + $0x8] sm:$0xff] }
 0x23a   :  { %v255_v49 = vld [vmem:[#allocation2] sm:$0xff]  ;;  %258 = vst.msk [vmem:[#allocation3 + $0x8] sm:$0xff] %vm32_vm0, %v256_v48 }
 0x23b   :  { %257 = vst.msk [vmem:[#allocation3] sm:$0xff] %vm32_vm0, %v255_v49 }
 0x23c   :  { %376 = shalt.err (!%p373_p4)
}
 0x23d   :  { %s377_s26 = scalar_lea.hbm %s496_s5, 256 }
 0x23e   :  { %p378_p5 = scmp.ne.s32.totalorder %s496_s5, %s377_s26  ;;  %p381_p6 = scmp.lt.u32.totalorder %s377_s26, %s496_s5 }
 0x240   :  { %p383_p7 = pnand %p381_p6, %p378_p5 }
 0x242   :  { %386 = shalt.err (!%p383_p7)
}
 0x243   :  { %s391_s1 = smov 128   ;;  %s392_s6 = smov 8  }
 0x244   :  { %270 = dma.vmem_to_hbm [thread:$0]  %s265_s3, 256, %s496_s5, [#allocation4], %s391_s1, %s391_s1, %s392_s6  }
 0x245   :  { %387 = dma.done.wait [#allocation4], 256  }
 0x246   :  { %388 = vsyncadd [#allocation4], 4294967040 }
 0x247   :  { %274 = vsyncpa [#allocation4], 1 }

</bundles_post_ra>
